<compile_context>
chip_gen: v5e
topology: v5e:2x2
jax: 0.10.0
libtpu: 0.0.40
codegen_flags: <defaults>
</compile_context>

<pallas_src>
import math
import functools

import jax
import jax.numpy as jnp
from jax import lax
from jax.experimental import pallas as pl
from jax.experimental.pallas import tpu as pltpu


# ------------------------------------------------------------------
# Fused multi-head attention kernel.  grid = (B, T // q_tile)
# ------------------------------------------------------------------
def _fused_mha_kernel(x_ref, wq_ref, wkv_ref, pw_ref, pb_ref, out_ref, *rest,
                      n_head, head_size, n_embd, q_tile, decoder, emit_attn):
    if emit_attn:
        attn_ref, kv_scr, concat_scr = rest
    else:
        attn_ref = None
        kv_scr, concat_scr = rest

    qi = pl.program_id(1)
    C = n_embd
    T = x_ref.shape[1]

    # --- K/V projection: once per batch element, cached in VMEM across q-tiles ---
    @pl.when(qi == 0)
    def _():
        x_full = x_ref[0].astype(jnp.bfloat16)                          # (T, C)
        kv = jnp.dot(x_full, wkv_ref[...],
                     preferred_element_type=jnp.float32)                # (T, 2C) f32
        kv_scr[...] = kv.astype(kv_scr.dtype)                           # bf16 cache

    # --- Q projection for this query tile ---
    q_start = pl.multiple_of(qi * q_tile, q_tile)
    x_q = x_ref[0, pl.ds(q_start, q_tile), :].astype(jnp.bfloat16)      # (Tq, C)
    q_all = jnp.dot(x_q, wq_ref[...], preferred_element_type=jnp.float32)
    # Fold the 1/sqrt(n_embd) score scale into q (T*C work instead of T*T).
    q_all = q_all * (1.0 / (C ** 0.5))
    q_b16 = q_all.astype(jnp.bfloat16)                                   # (Tq, C)

    kv_all = kv_scr[...]                                                 # (T, 2C) bf16
    k_b16 = kv_all[:, :C]                                                # (T, C)
    v_b16 = kv_all[:, C:]                                                # (T, C)

    if decoder:
        row = lax.broadcasted_iota(jnp.int32, (q_tile, T), 0) + qi * q_tile
        col = lax.broadcasted_iota(jnp.int32, (q_tile, T), 1)
        causal = col <= row

    for h in range(n_head):
        lo = h * head_size
        hi = lo + head_size
        qh = q_b16[:, lo:hi]                                             # (Tq, H)
        kh = k_b16[:, lo:hi]                                             # (T, H)
        vh = v_b16[:, lo:hi]                                             # (T, H)

        # scores = q @ k^T  (contract on the head dim; no explicit transpose)
        s = lax.dot_general(qh, kh, (((1,), (1,)), ((), ())),
                            preferred_element_type=jnp.float32)          # (Tq, T)
        if decoder:
            # Large finite negative instead of -inf (row diagonal is always
            # unmasked so result is identical; avoids exp(-inf)/0 edge cases).
            s = jnp.where(causal, s, -1e30)

        # softmax in f32; reciprocal on the EUP slot.
        m = jnp.max(s, axis=-1, keepdims=True)
        e = jnp.exp(s - m)
        denom = jnp.sum(e, axis=-1, keepdims=True)
        p = e * pl.reciprocal(denom, approx=True)                        # (Tq, T)

        if emit_attn:
            attn_ref[0, h] = p.astype(attn_ref.dtype)

        head_out = jnp.dot(p.astype(jnp.bfloat16), vh,
                           preferred_element_type=jnp.float32)           # (Tq, H)
        concat_scr[:, lo:hi] = head_out                                  # lane-dense concat in VMEM

    # Output projection fused in the same kernel: (Tq, C) @ (C, C) + b
    y = jnp.dot(concat_scr[...].astype(jnp.bfloat16), pw_ref[...],
                preferred_element_type=jnp.float32) + pb_ref[...]
    out_ref[0] = y.astype(out_ref.dtype)


def multi_head_attention(x, params, *, decoder=False, with_attn_maps=True,
                         q_tile=None, attn_dtype=jnp.float32):
    """Returns (res, attention_maps) matching the PyTorch module (dropout = eval/identity).

    attention_maps is a list of (B, T, T) arrays, one per head (empty if
    with_attn_maps=False).
    """
    B, T, C = x.shape
    wq, wk, wv = params["wq"], params["wk"], params["wv"]
    n_head, _, H = wq.shape
    assert n_head * H == C, "n_head * head_size must equal n_embd"

    # Trace-time weight fusion: concat heads along the output dim, cast to bf16
    # (halves weight DMA traffic; matmuls accumulate in f32).
    w_q = jnp.transpose(wq, (1, 0, 2)).reshape(C, C).astype(jnp.bfloat16)          # (C, C)
    w_k = jnp.transpose(wk, (1, 0, 2)).reshape(C, C)
    w_v = jnp.transpose(wv, (1, 0, 2)).reshape(C, C)
    w_kv = jnp.concatenate([w_k, w_v], axis=-1).astype(jnp.bfloat16)                # (C, 2C)
    proj_w = params["proj_w"].astype(jnp.bfloat16)                                  # (C, C)
    proj_b = params["proj_b"].reshape(1, C).astype(jnp.float32)                     # (1, C)

    # Query tiling keeps the (Tq, T) score tile + attn output block bounded in VMEM.
    if q_tile is None:
        q_tile = T if T <= 256 else 256
    if T % q_tile != 0:
        q_tile = T
    n_qt = T // q_tile

    kernel = functools.partial(
        _fused_mha_kernel, n_head=n_head, head_size=H, n_embd=C,
        q_tile=q_tile, decoder=decoder, emit_attn=with_attn_maps)

    if with_attn_maps:
        out_shape = (jax.ShapeDtypeStruct((B, T, C), jnp.float32),
                     jax.ShapeDtypeStruct((B, n_head, T, T), attn_dtype))
        out_specs = (pl.BlockSpec((1, q_tile, C), lambda b, t: (b, t, 0)),
                     pl.BlockSpec((1, n_head, q_tile, T), lambda b, t: (b, 0, t, 0)))
    else:
        out_shape = jax.ShapeDtypeStruct((B, T, C), jnp.float32)
        out_specs = pl.BlockSpec((1, q_tile, C), lambda b, t: (b, t, 0))

    outs = pl.pallas_call(
        kernel,
        out_shape=out_shape,
        grid_spec=pltpu.PrefetchScalarGridSpec(
            num_scalar_prefetch=0,
            grid=(B, n_qt),
            in_specs=[
                # x: DMA'd once per batch (block index constant along inner q-tile axis)
                pl.BlockSpec((1, T, C), lambda b, t: (b, 0, 0)),
                pl.BlockSpec((C, C), lambda b, t: (0, 0)),        # fused Wq
                pl.BlockSpec((C, 2 * C), lambda b, t: (0, 0)),    # fused Wk | Wv
                pl.BlockSpec((C, C), lambda b, t: (0, 0)),        # proj W
                pl.BlockSpec((1, C), lambda b, t: (0, 0)),        # proj b
            ],
            out_specs=out_specs,
            scratch_shapes=[
                pltpu.VMEM((T, 2 * C), jnp.bfloat16),   # per-batch K|V cache (reused across q-tiles)
                pltpu.VMEM((q_tile, C), jnp.float32),   # head concat buffer
            ],
        ),
        compiler_params=pltpu.CompilerParams(
            # Batch axis is megacore-parallel; the q-tile axis must be sequential
            # so the per-batch K/V cache (written at q-tile 0) is valid for later tiles.
            dimension_semantics=("parallel", "arbitrary"),
            vmem_limit_bytes=64 * 1024 * 1024),
    )(x, w_q, w_kv, proj_w, proj_b)

    if with_attn_maps:
        res, attn = outs
        return res, [attn[:, h] for h in range(n_head)]
    return outs, []


# ------------------------------------------------------------------
# Param init (mimics nn.Linear uniform(-1/sqrt(fan_in), 1/sqrt(fan_in)))
# ------------------------------------------------------------------
def init_params(key, n_head, head_size, n_embd):
    ks = jax.random.split(key, 5)
    lim = 1.0 / math.sqrt(n_embd)
    wq = jax.random.uniform(ks[0], (n_head, n_embd, head_size), jnp.float32, -lim, lim)
    wk = jax.random.uniform(ks[1], (n_head, n_embd, head_size), jnp.float32, -lim, lim)
    wv = jax.random.uniform(ks[2], (n_head, n_embd, head_size), jnp.float32, -lim, lim)
    proj_w = jax.random.uniform(ks[3], (n_embd, n_embd), jnp.float32, -lim, lim)
    proj_b = jax.random.uniform(ks[4], (n_embd,), jnp.float32, -lim, lim)
    return dict(wq=wq, wk=wk, wv=wv, proj_w=proj_w, proj_b=proj_b)


# ------------------------------------------------------------------
# Pure-JAX (f32) reference for sanity checking
# ------------------------------------------------------------------
def reference_mha(x, params, *, decoder=False):
    B, T, C = x.shape
    outs, maps = [], []
    n_head = params["wq"].shape[0]
    for h in range(n_head):
        q = x @ params["wq"][h]
        k = x @ params["wk"][h]
        v = x @ params["wv"][h]
        s = (q @ jnp.swapaxes(k, -1, -2)) / (C ** 0.5)
        if decoder:
            mask = jnp.tril(jnp.ones((T, T), bool))
            s = jnp.where(mask, s, -jnp.inf)
        p = jax.nn.softmax(s, axis=-1)
        maps.append(p)
        outs.append(p @ v)
    res = jnp.concatenate(outs, axis=-1) @ params["proj_w"] + params["proj_b"]
    return res, maps


if __name__ == "__main__":
    # Small shapes consistent with the module: n_head * head_size == n_embd.
    B, T = 2, 8                    # batch, time (block_size)
    n_head, head_size = 2, 16
    n_embd = n_head * head_size    # 32

    key = jax.random.PRNGKey(0)
    kx, kp = jax.random.split(key)
    x = jax.random.normal(kx, (B, T, n_embd), jnp.float32)
    params = init_params(kp, n_head, head_size, n_embd)

    # Encoder (default) path.
    res, attn_maps = multi_head_attention(x, params, decoder=False)
    res = jax.block_until_ready(res)
    attn_maps = [jax.block_until_ready(a) for a in attn_maps]

    ref_res, ref_maps = reference_mha(x, params, decoder=False)
    # bf16 MXU operands + approx reciprocal -> loose-ish tolerance vs f32 reference.
    assert jnp.allclose(res, ref_res, atol=2e-2, rtol=2e-2), "output mismatch"
    for h in range(n_head):
        assert jnp.allclose(attn_maps[h], ref_maps[h], atol=1e-2, rtol=1e-2), "attn map mismatch"

    # Decoder (causal) path.
    res_d, _ = multi_head_attention(x, params, decoder=True)
    res_d = jax.block_until_ready(res_d)
    ref_res_d, _ = reference_mha(x, params, decoder=True)
    assert jnp.allclose(res_d, ref_res_d, atol=2e-2, rtol=2e-2), "decoder output mismatch"

    # No-attention-map fast path (skips the O(T^2) HBM write).
    res_fast, _ = multi_head_attention(x, params, decoder=False, with_attn_maps=False)
    res_fast = jax.block_until_ready(res_fast)
    assert jnp.allclose(res_fast, ref_res, atol=2e-2, rtol=2e-2), "fast-path output mismatch"

    print("KERNEL_OK")
</pallas_src>

<mosaic_0001>
module attributes {stable_mosaic.version = 11 : i64} {
  func.func @_fused_mha_kernel(%arg0: i32, %arg1: i32, %arg2: memref<1x8x32xf32, #tpu.memory_space<vmem>>, %arg3: memref<32x32xbf16, #tpu.memory_space<vmem>>, %arg4: memref<32x64xbf16, #tpu.memory_space<vmem>>, %arg5: memref<32x32xbf16, #tpu.memory_space<vmem>>, %arg6: memref<1x32xf32, #tpu.memory_space<vmem>>, %arg7: memref<1x8x32xf32, #tpu.memory_space<vmem>>, %arg8: memref<1x2x8x8xf32, #tpu.memory_space<vmem>>, %arg9: memref<8x64xbf16, #tpu.memory_space<vmem>>, %arg10: memref<8x32xf32, #tpu.memory_space<vmem>>) attributes {dimension_semantics = [#tpu.dimension_semantics<parallel>, #tpu.dimension_semantics<arbitrary>], iteration_bounds = array<i64: 2, 1>, scalar_prefetch = 0 : i64, scratch_operands = 2 : i64, tpu.core_type = #tpu.core_type<tc>, window_params = [{transform_indices = @transform_0, window_bounds = array<i64: 1, 8, 32>}, {pipeline_mode = #tpu.pipeline_mode<synchronous>, transform_indices = @transform_1, window_bounds = array<i64: 32, 32>}, {pipeline_mode = #tpu.pipeline_mode<synchronous>, transform_indices = @transform_2, window_bounds = array<i64: 32, 64>}, {pipeline_mode = #tpu.pipeline_mode<synchronous>, transform_indices = @transform_3, window_bounds = array<i64: 32, 32>}, {pipeline_mode = #tpu.pipeline_mode<synchronous>, transform_indices = @transform_4, window_bounds = array<i64: 1, 32>}, {transform_indices = @transform_5, window_bounds = array<i64: 1, 8, 32>}, {transform_indices = @transform_6, window_bounds = array<i64: 1, 2, 8, 8>}]} {
    %c0_i32 = arith.constant 0 : i32
    %0 = arith.cmpi eq, %arg1, %c0_i32 : i32
    %1 = arith.extui %0 : i1 to i32
    %c0_i32_0 = arith.constant 0 : i32
    %2 = arith.cmpi ne, %1, %c0_i32_0 : i32
    scf.if %2 {
      %c0_35 = arith.constant 0 : index
      %c0_36 = arith.constant 0 : index
      %c0_37 = arith.constant 0 : index
      %67 = vector.load %arg2[%c0_35, %c0_36, %c0_37] : memref<1x8x32xf32, #tpu.memory_space<vmem>>, vector<1x8x32xf32>
      %68 = vector.shape_cast %67 : vector<1x8x32xf32> to vector<8x32xf32>
      %69 = arith.truncf %68 : vector<8x32xf32> to vector<8x32xbf16>
      %c0_38 = arith.constant 0 : index
      %c0_39 = arith.constant 0 : index
      %70 = vector.load %arg4[%c0_38, %c0_39] : memref<32x64xbf16, #tpu.memory_space<vmem>>, vector<32x64xbf16>
      %cst_40 = arith.constant dense<0.000000e+00> : vector<8x64xf32>
      %71 = tpu.matmul %69, %70, %cst_40 {dimension_numbers = #tpu.dot_dimension_numbers<[1], [0], [0], [1], [0, 0, 1, 1], [], []>} : vector<8x32xbf16>, vector<32x64xbf16>, vector<8x64xf32> -> vector<8x64xf32>
      %72 = arith.truncf %71 : vector<8x64xf32> to vector<8x64xbf16>
      %c0_41 = arith.constant 0 : index
      %c0_42 = arith.constant 0 : index
      %73 = vector.load %arg9[%c0_41, %c0_42] : memref<8x64xbf16, #tpu.memory_space<vmem>>, vector<8x64xbf16>
      tpu.vector_store %arg9[%c0_41, %c0_42], %72 {strides = array<i32>} : memref<8x64xbf16, #tpu.memory_space<vmem>>, vector<8x64xbf16>,
    } else {
    }
    %c8_i32 = arith.constant 8 : i32
    %3 = arith.muli %arg1, %c8_i32 : i32
    %4 = tpu.assume_multiple %3, 8 : i32
    %c0 = arith.constant 0 : index
    %5 = arith.index_cast %4 : i32 to index
    %c0_1 = arith.constant 0 : index
    %6 = vector.load %arg2[%c0, %5, %c0_1] : memref<1x8x32xf32, #tpu.memory_space<vmem>>, vector<1x8x32xf32>
    %7 = vector.shape_cast %6 : vector<1x8x32xf32> to vector<8x32xf32>
    %8 = arith.truncf %7 : vector<8x32xf32> to vector<8x32xbf16>
    %c0_2 = arith.constant 0 : index
    %c0_3 = arith.constant 0 : index
    %9 = vector.load %arg3[%c0_2, %c0_3] : memref<32x32xbf16, #tpu.memory_space<vmem>>, vector<32x32xbf16>
    %cst = arith.constant dense<0.000000e+00> : vector<8x32xf32>
    %10 = tpu.matmul %8, %9, %cst {dimension_numbers = #tpu.dot_dimension_numbers<[1], [0], [0], [1], [0, 0, 1, 1], [], []>} : vector<8x32xbf16>, vector<32x32xbf16>, vector<8x32xf32> -> vector<8x32xf32>
    %cst_4 = arith.constant 0.176776692 : f32
    %11 = vector.broadcast %cst_4 : f32 to vector<8x32xf32>
    %12 = arith.mulf %10, %11 : vector<8x32xf32>
    %13 = arith.truncf %12 : vector<8x32xf32> to vector<8x32xbf16>
    %c0_5 = arith.constant 0 : index
    %c0_6 = arith.constant 0 : index
    %14 = vector.load %arg9[%c0_5, %c0_6] : memref<8x64xbf16, #tpu.memory_space<vmem>>, vector<8x64xbf16>
    %15 = vector.extract_strided_slice %14 {offsets = [0, 0], sizes = [8, 32], strides = [1, 1]} : vector<8x64xbf16> to vector<8x32xbf16>
    %16 = vector.extract_strided_slice %14 {offsets = [0, 32], sizes = [8, 32], strides = [1, 1]} : vector<8x64xbf16> to vector<8x32xbf16>
    %17 = vector.extract_strided_slice %13 {offsets = [0, 0], sizes = [8, 16], strides = [1, 1]} : vector<8x32xbf16> to vector<8x16xbf16>
    %18 = vector.extract_strided_slice %15 {offsets = [0, 0], sizes = [8, 16], strides = [1, 1]} : vector<8x32xbf16> to vector<8x16xbf16>
    %19 = vector.extract_strided_slice %16 {offsets = [0, 0], sizes = [8, 16], strides = [1, 1]} : vector<8x32xbf16> to vector<8x16xbf16>
    %cst_7 = arith.constant dense<0.000000e+00> : vector<8x8xf32>
    %20 = tpu.matmul %17, %18, %cst_7 {dimension_numbers = #tpu.dot_dimension_numbers<[1], [1], [0], [0], [0, 0, 1, 0], [], []>} : vector<8x16xbf16>, vector<8x16xbf16>, vector<8x8xf32> -> vector<8x8xf32>
    %cst_8 = arith.constant dense<0xFF800000> : vector<8xf32>
    %21 = vector.multi_reduction <maximumf>, %20, %cst_8 [1] : vector<8x8xf32> to vector<8xf32>
    %22 = vector.shape_cast %21 : vector<8xf32> to vector<8x1xf32>
    %23 = vector.broadcast %22 : vector<8x1xf32> to vector<8x8xf32>
    %24 = arith.subf %20, %23 : vector<8x8xf32>
    %25 = math.exp %24 : vector<8x8xf32>
    %cst_9 = arith.constant dense<0.000000e+00> : vector<8xf32>
    %26 = vector.multi_reduction <add>, %25, %cst_9 [1] : vector<8x8xf32> to vector<8xf32>
    %27 = vector.shape_cast %26 : vector<8xf32> to vector<8x1xf32>
    %28 = tpu.reciprocal %27 {approx = true} : vector<8x1xf32> -> vector<8x1xf32>
    %29 = vector.broadcast %28 : vector<8x1xf32> to vector<8x8xf32>
    %30 = arith.mulf %25, %29 : vector<8x8xf32>
    %c0_10 = arith.constant 0 : index
    %c0_11 = arith.constant 0 : index
    %c0_12 = arith.constant 0 : index
    %c0_13 = arith.constant 0 : index
    %31 = vector.load %arg8[%c0_10, %c0_11, %c0_12, %c0_13] : memref<1x2x8x8xf32, #tpu.memory_space<vmem>>, vector<1x1x8x8xf32>
    %32 = vector.shape_cast %31 : vector<1x1x8x8xf32> to vector<8x8xf32>
    %33 = vector.shape_cast %30 : vector<8x8xf32> to vector<1x1x8x8xf32>
    tpu.vector_store %arg8[%c0_10, %c0_11, %c0_12, %c0_13], %33 {strides = array<i32>} : memref<1x2x8x8xf32, #tpu.memory_space<vmem>>, vector<1x1x8x8xf32>,
    %34 = arith.truncf %30 : vector<8x8xf32> to vector<8x8xbf16>
    %cst_14 = arith.constant dense<0.000000e+00> : vector<8x16xf32>
    %35 = tpu.matmul %34, %19, %cst_14 {dimension_numbers = #tpu.dot_dimension_numbers<[1], [0], [0], [1], [0, 0, 1, 1], [], []>} : vector<8x8xbf16>, vector<8x16xbf16>, vector<8x16xf32> -> vector<8x16xf32>
    %c0_15 = arith.constant 0 : index
    %c0_16 = arith.constant 0 : index
    %36 = vector.load %arg10[%c0_15, %c0_16] : memref<8x32xf32, #tpu.memory_space<vmem>>, vector<8x16xf32>
    tpu.vector_store %arg10[%c0_15, %c0_16], %35 {strides = array<i32>} : memref<8x32xf32, #tpu.memory_space<vmem>>, vector<8x16xf32>,
    %37 = vector.extract_strided_slice %13 {offsets = [0, 16], sizes = [8, 16], strides = [1, 1]} : vector<8x32xbf16> to vector<8x16xbf16>
    %38 = vector.extract_strided_slice %15 {offsets = [0, 16], sizes = [8, 16], strides = [1, 1]} : vector<8x32xbf16> to vector<8x16xbf16>
    %39 = vector.extract_strided_slice %16 {offsets = [0, 16], sizes = [8, 16], strides = [1, 1]} : vector<8x32xbf16> to vector<8x16xbf16>
    %cst_17 = arith.constant dense<0.000000e+00> : vector<8x8xf32>
    %40 = tpu.matmul %37, %38, %cst_17 {dimension_numbers = #tpu.dot_dimension_numbers<[1], [1], [0], [0], [0, 0, 1, 0], [], []>} : vector<8x16xbf16>, vector<8x16xbf16>, vector<8x8xf32> -> vector<8x8xf32>
    %cst_18 = arith.constant dense<0xFF800000> : vector<8xf32>
    %41 = vector.multi_reduction <maximumf>, %40, %cst_18 [1] : vector<8x8xf32> to vector<8xf32>
    %42 = vector.shape_cast %41 : vector<8xf32> to vector<8x1xf32>
    %43 = vector.broadcast %42 : vector<8x1xf32> to vector<8x8xf32>
    %44 = arith.subf %40, %43 : vector<8x8xf32>
    %45 = math.exp %44 : vector<8x8xf32>
    %cst_19 = arith.constant dense<0.000000e+00> : vector<8xf32>
    %46 = vector.multi_reduction <add>, %45, %cst_19 [1] : vector<8x8xf32> to vector<8xf32>
    %47 = vector.shape_cast %46 : vector<8xf32> to vector<8x1xf32>
    %48 = tpu.reciprocal %47 {approx = true} : vector<8x1xf32> -> vector<8x1xf32>
    %49 = vector.broadcast %48 : vector<8x1xf32> to vector<8x8xf32>
    %50 = arith.mulf %45, %49 : vector<8x8xf32>
    %c0_20 = arith.constant 0 : index
    %c1 = arith.constant 1 : index
    %c0_21 = arith.constant 0 : index
    %c0_22 = arith.constant 0 : index
    %51 = vector.load %arg8[%c0_20, %c1, %c0_21, %c0_22] : memref<1x2x8x8xf32, #tpu.memory_space<vmem>>, vector<1x1x8x8xf32>
    %52 = vector.shape_cast %51 : vector<1x1x8x8xf32> to vector<8x8xf32>
    %53 = vector.shape_cast %50 : vector<8x8xf32> to vector<1x1x8x8xf32>
    tpu.vector_store %arg8[%c0_20, %c1, %c0_21, %c0_22], %53 {strides = array<i32>} : memref<1x2x8x8xf32, #tpu.memory_space<vmem>>, vector<1x1x8x8xf32>,
    %54 = arith.truncf %50 : vector<8x8xf32> to vector<8x8xbf16>
    %cst_23 = arith.constant dense<0.000000e+00> : vector<8x16xf32>
    %55 = tpu.matmul %54, %39, %cst_23 {dimension_numbers = #tpu.dot_dimension_numbers<[1], [0], [0], [1], [0, 0, 1, 1], [], []>} : vector<8x8xbf16>, vector<8x16xbf16>, vector<8x16xf32> -> vector<8x16xf32>
    %c0_24 = arith.constant 0 : index
    %c16 = arith.constant 16 : index
    %56 = vector.load %arg10[%c0_24, %c16] : memref<8x32xf32, #tpu.memory_space<vmem>>, vector<8x16xf32>
    tpu.vector_store %arg10[%c0_24, %c16], %55 {strides = array<i32>} : memref<8x32xf32, #tpu.memory_space<vmem>>, vector<8x16xf32>,
    %c0_25 = arith.constant 0 : index
    %c0_26 = arith.constant 0 : index
    %57 = vector.load %arg10[%c0_25, %c0_26] : memref<8x32xf32, #tpu.memory_space<vmem>>, vector<8x32xf32>
    %58 = arith.truncf %57 : vector<8x32xf32> to vector<8x32xbf16>
    %c0_27 = arith.constant 0 : index
    %c0_28 = arith.constant 0 : index
    %59 = vector.load %arg5[%c0_27, %c0_28] : memref<32x32xbf16, #tpu.memory_space<vmem>>, vector<32x32xbf16>
    %cst_29 = arith.constant dense<0.000000e+00> : vector<8x32xf32>
    %60 = tpu.matmul %58, %59, %cst_29 {dimension_numbers = #tpu.dot_dimension_numbers<[1], [0], [0], [1], [0, 0, 1, 1], [], []>} : vector<8x32xbf16>, vector<32x32xbf16>, vector<8x32xf32> -> vector<8x32xf32>
    %c0_30 = arith.constant 0 : index
    %c0_31 = arith.constant 0 : index
    %61 = vector.load %arg6[%c0_30, %c0_31] : memref<1x32xf32, #tpu.memory_space<vmem>>, vector<1x32xf32>
    %62 = vector.broadcast %61 : vector<1x32xf32> to vector<8x32xf32>
    %63 = arith.addf %60, %62 : vector<8x32xf32>
    %c0_32 = arith.constant 0 : index
    %c0_33 = arith.constant 0 : index
    %c0_34 = arith.constant 0 : index
    %64 = vector.load %arg7[%c0_32, %c0_33, %c0_34] : memref<1x8x32xf32, #tpu.memory_space<vmem>>, vector<1x8x32xf32>
    %65 = vector.shape_cast %64 : vector<1x8x32xf32> to vector<8x32xf32>
    %66 = vector.shape_cast %63 : vector<8x32xf32> to vector<1x8x32xf32>
    tpu.vector_store %arg7[%c0_32, %c0_33, %c0_34], %66 {strides = array<i32>} : memref<1x8x32xf32, #tpu.memory_space<vmem>>, vector<1x8x32xf32>,
    return
  }
  func.func @transform_0(%arg0: i32, %arg1: i32) -> (i32, i32, i32) {
    %c0_i32 = arith.constant 0 : i32
    %c0_i32_0 = arith.constant 0 : i32
    %c0_i32_1 = arith.constant 0 : i32
    return %arg0, %c0_i32, %c0_i32_0 : i32, i32, i32
  }
  func.func @transform_1(%arg0: i32, %arg1: i32) -> (i32, i32) {
    %c0_i32 = arith.constant 0 : i32
    %c0_i32_0 = arith.constant 0 : i32
    %c0_i32_1 = arith.constant 0 : i32
    return %c0_i32, %c0_i32_0 : i32, i32
  }
  func.func @transform_2(%arg0: i32, %arg1: i32) -> (i32, i32) {
    %c0_i32 = arith.constant 0 : i32
    %c0_i32_0 = arith.constant 0 : i32
    %c0_i32_1 = arith.constant 0 : i32
    return %c0_i32, %c0_i32_0 : i32, i32
  }
  func.func @transform_3(%arg0: i32, %arg1: i32) -> (i32, i32) {
    %c0_i32 = arith.constant 0 : i32
    %c0_i32_0 = arith.constant 0 : i32
    %c0_i32_1 = arith.constant 0 : i32
    return %c0_i32, %c0_i32_0 : i32, i32
  }
  func.func @transform_4(%arg0: i32, %arg1: i32) -> (i32, i32) {
    %c0_i32 = arith.constant 0 : i32
    %c0_i32_0 = arith.constant 0 : i32
    %c0_i32_1 = arith.constant 0 : i32
    return %c0_i32, %c0_i32_0 : i32, i32
  }
  func.func @transform_5(%arg0: i32, %arg1: i32) -> (i32, i32, i32) {
    %c0_i32 = arith.constant 0 : i32
    %c0_i32_0 = arith.constant 0 : i32
    return %arg0, %arg1, %c0_i32 : i32, i32, i32
  }
  func.func @transform_6(%arg0: i32, %arg1: i32) -> (i32, i32, i32, i32) {
    %c0_i32 = arith.constant 0 : i32
    %c0_i32_0 = arith.constant 0 : i32
    %c0_i32_1 = arith.constant 0 : i32
    return %arg0, %c0_i32, %arg1, %c0_i32_0 : i32, i32, i32, i32
  }
}

</mosaic_0001>

<bundles_post_ra>
// kernel: tpu_custom_call.1
= control target key start
LH: loop header
LB: loop body
LE: loop exit
PB: predicated region body
PF: predicated region fallthrough
CT: control target
= control target key end

     0   :  { %s1459_s0 = inlined_call_operand.hbm [shape: f32[2,8,32], index: 0, kind: input, shape index: {}]   ;;  %s1460_s1 = inlined_call_operand.hbm [shape: bf16[32,32], index: 1, kind: input, shape index: {}]   ;;  %s1461_s2 = inlined_call_operand.hbm [shape: bf16[32,64], index: 2, kind: input, shape index: {}]   ;;  %s1462_s3 = inlined_call_operand.hbm [shape: bf16[32,32], index: 3, kind: input, shape index: {}]   ;;  %s1463_s4 = inlined_call_operand.vmem [shape: f32[1,32], index: 4, kind: input, shape index: {}]   ;;  %s1464_s5 = inlined_call_operand.hbm [shape: f32[2,8,32], index: 5, kind: output, shape index: {0}]   ;;  %s1465_s6 = inlined_call_operand.hbm [shape: f32[2,2,8,8], index: 6, kind: output, shape index: {1}]  }
   0x1   :  { %1467 = sst [smem:[#allocation20_spill]] %s1459_s0 }
   0x2   :  { %1468 = sst [smem:[#allocation21_spill]] %s1460_s1 }
   0x3   :  { %12 = vsyncpa [#allocation5], 0 }
   0x4   :  { %14 = vsyncpa [#allocation5 + $0x1], 0 }
   0x5   :  { %15 = vsyncpa [#allocation8], 0 }
   0x6   :  { %16 = vsyncpa [#allocation11], 0 }
   0x7   :  { %17 = vsyncpa [#allocation6], 0 }
   0x8   :  { %19 = vsyncpa [#allocation6 + $0x1], 0 }
   0x9   :  { %20 = vsyncpa [#allocation14], 0 }
   0xa   :  { %22 = vsyncpa [#allocation14 + $0x1], 0  ;;  %s1247_s21 = smov 0   ;;  %s1249_s22 = smov 0  }
   0xb   :  { %s1251_s23 = smov 0   ;;  %s1253_s24 = smov 0  }
   0xc   :  { %s1255_s25 = smov 0   ;;  %s1257_s26 = smov 0  }
   0xd LB: > { %s780_s27 = sadd.s32 4294967295, %s1199_s26   ;;  %p782_p0 = scmp.ge.s32.totalorder %s1199_s26, 1  ;;  %s1199_s26 = sphi %s1257_s26, %s28_s26   ;;  %s1195_s25 = sphi %s1255_s25, %s1483_s25   ;;  %s1191_s24 = sphi %s1253_s24, %s1482_s24   ;;  %s1187_s23 = sphi %s1251_s23, %s1481_s23   ;;  %s1183_s22 = sphi %s1249_s22, %s1480_s22   ;;  %s1179_s21 = sphi %s1247_s21, %s1479_s21  }
   0xe   : > { %p1281_p1 = scmp.eq.s32.totalorder %s780_s27, 0  ;;  %p211_p2 = scmp.lt.s32.totalorder %s1199_s26, 3 }
   0xf   : > { %s1470_s1 = sld [smem:[#allocation21_spill]]  ;;  %s1201_s9 = smov [#allocation7]  }
  0x10   : > { %p1289_p3 = pnand %p782_p0, %p211_p2  ;;  %s224_s10 = sshll.u32 %s1201_s9, 4  ;;  %s225_s10 = int_to_ptr.vmem [resolvable:$true] %s224_s10 }
  0x11   : > { %p786_p6 = scmp.ge.s32.totalorder %s1199_s26, 2  ;;  %s236_s14 = sshll.u32 %s1461_s2, 4  ;;  %s237_s14 = int_to_ptr.hbm [resolvable:$true] %s236_s14 }
  0x12   : > { %p860_p4 = pneg %p1289_p3  ;;  %s1202_s15 = smov 64  }
  0x13   : > { %s1203_s16 = smov 4   ;;  %s1204_s17 = smov [#allocation9]  }
  0x14   : > { %p1297_p5 = pnand %p860_p4, %p1281_p1  ;;  %s238_s18 = sshll.u32 %s1204_s17, 4  ;;  %s239_s18 = int_to_ptr.vmem [resolvable:$true] %s238_s18 }
  0x15   : > { %s222_s7 = sshll.u32 %s1470_s1, 4  ;;  %s250_s29 = sshll.u32 %s1462_s3, 4  ;;  %s223_s7 = int_to_ptr.hbm [resolvable:$true] %s222_s7  ;;  %s251_s29 = int_to_ptr.hbm [resolvable:$true] %s250_s29 }
  0x16   : > { %863 = dma.hbm_to_vmem [thread:$0]  (!%p1297_p5), %s223_s7, 256, %s225_s10, [#allocation8], %s1202_s15, %s1202_s15, %s1203_s16  }
  0x17   : > { %866 = dma.hbm_to_vmem [thread:$0]  (!%p1297_p5), %s237_s14, 256, %s239_s18, [#allocation8], %s1202_s15, %s1202_s15, %s1203_s16  }
  0x18   : > { %s1205_s30 = smov [#allocation10]   ;;  %s781_s7 = sadd.s32 4294967294, %s1199_s26  }
  0x19   : > { %s252_s9 = sshll.u32 %s1205_s30, 4  ;;  %s40_s10 = sadd.s32 1, %s1195_s25  ;;  %s253_s9 = int_to_ptr.vmem [resolvable:$true] %s252_s9 }
  0x1a   : > { %869 = dma.hbm_to_vmem [thread:$0]  (!%p1297_p5), %s251_s29, 256, %s253_s9, [#allocation11], %s1202_s15, %s1202_s15, %s1203_s16  }
  0x1b   : > { %s47_s12 = sadd.s32 1, %s1187_s23  ;;  %p42_p7 = scmp.ge.s32.totalorder %s40_s10, 2 }
  0x1c   : > { %p54_p8 = scmp.ne.s32.totalorder %s1187_s23, %s1183_s22  ;;  %p55_p9 = scmp.eq.s32.totalorder %s1199_s26, 0 }
  0x1d   : > { %p60_p10 = scmp.ne.s32.totalorder %s1183_s22, %s1179_s21  ;;  %s1485_s10 = smov (%p42_p7, %s40_s10), 0 }
  0x1e   : > { %p1324_p11 = por %p55_p9, %p54_p8  ;;  %s44_s14 = ssub.s32 %s1195_s25, %s1485_s10 }
  0x1f   : > { %p1330_p12 = por %p1281_p1, %p60_p10  ;;  %p170_p13 = scmp.eq.s32.totalorder %s780_s27, 1 }
  0x20   : > { %p45_p0 = scmp.eq.s32.totalorder %s44_s14, 0  ;;  %p176_p2 = scmp.eq.s32.totalorder %s781_s7, 1 }
  0x21   : > { %p1338_p4 = por %p170_p13, %p54_p8  ;;  %p884_p5 = scmp.lt.s32.totalorder %s1199_s26, 2 }
  0x22   : > { %s1344_s16 = scalar_select %p45_p0, %s1187_s23, %s47_s12  }
  0x23   : > { %p1346_p7 = por %p176_p2, %p60_p10  ;;  %s269_s18 = sand.u32 1, %s1187_s23  }
  0x24   : > { %s787_s19 = sshll.u32 %s269_s18, 3  ;;  %s788_s20 = sshll.u32 %s1195_s25, 3 }
  0x25   : > { %s1477_s0 = sld [smem:[#allocation20_spill]]  ;;  %s273_s9 = scalar_lea.vmem [#allocation4], %s787_s19 }
  0x26   : > { %s281_s7 = sshll.u32 %s273_s9, 4  ;;  %p871_p8 = pnand %p884_p5, %p1324_p11  ;;  %s282_s7 = int_to_ptr.vmem [resolvable:$true] %s281_s7 }
  0x27   : > { %s270_s12 = scalar_lea.sflag [#allocation5], %s269_s18  ;;  %s1360_s1 = sand.u32 (!%p1289_p3), 1, %s1183_s22  }
  0x28   : > { %s293_s19 = scalar_lea.sflag (!%p1289_p3), [#allocation5], %s1360_s1 }
  0x29   : > { %290 = sbr.rel (%p1289_p3) target bundleno = 1380 (0x564), region = 40 }
  0x2b   : > { %s277_s27 = scalar_lea.hbm %s1477_s0, %s788_s20  ;;  %s1466_s20 = sshll.u32 (!%p1289_p3), %s1360_s1, 3 }
  0x2c   : > { %s279_s14 = sshll.u32 %s277_s27, 4  ;;  %s296_s29 = scalar_lea.vmem (!%p1289_p3), [#allocation4], %s1466_s20  ;;  %s280_s14 = int_to_ptr.hbm [resolvable:$true] %s279_s14 }
  0x2d   : > { %873 = dma.hbm_to_vmem [thread:$0]  (!%p871_p8), %s280_s14, 128, %s282_s7, %s270_s12  }
  0x2e   : > { %1158 = dma.done.wait (%p1330_p12), %s293_s19, 128  }
  0x2f   : > { %1160 = vsyncadd (%p1330_p12), %s293_s19, 4294967168 }
  0x30   : > { %1162 = dma.done.wait (%p1281_p1), [#allocation8], 512  }
  0x31   : > { %1164 = vsyncadd (%p1281_p1), [#allocation8], 4294966784 }
  0x32   : > { %1166 = dma.done.wait (%p1281_p1), [#allocation11], 256  }
  0x33   : > { %1168 = vsyncadd (%p1281_p1), [#allocation11], 4294967040  ;;  %v836_v0 = vld [vmem:[#allocation9 + $0x8] sm:$0xff]  ;;  %v838_v1 = vld [vmem:[#allocation7 + $0x8] sm:$0xff]  ;;  %vm369_vm0 = vcmask 261120   ;;  %vm387_vm1 = vcmask 519168  }
  0x34   : > { %379 = vmatpush.bf16.msra.mxu0 %v836_v0  ;;  %v835_v2 = vld [vmem:[#allocation9] sm:$0xff]  ;;  %419 = vmatpush.bf16.msra.mxu1 %v838_v1  ;;  %v837_v4 = vld [vmem:[#allocation7] sm:$0xff]  ;;  %vm429_vm2 = vcmask 130048   ;;  %s1206_s28 = smov 112   ;;  %s1207_s8 = smov 96   ;;  %vm471_vm3 = vcmask 1043456  }
  0x35   : > { %v351_v3 = vld [vmem:[%s296_s29] sm:$0xff]  ;;  %s1208_s13 = smov 80   ;;  %vm449_vm4 = vcmask 64512   ;;  %s795_s11 = sshll.u32 %s1360_s1, 4  ;;  %v840_v52 = vld [vmem:[#allocation10 + $0x8] sm:$0xff]  ;;  %v839_v55 = vld [vmem:[#allocation10] sm:$0xff] }
  0x36   : > { %v352_v5 = vpack.c.bf16 %v351_v3, %v351_v3  ;;  %s1386_s18 = scalar_lea.vmem [#allocation13], %s795_s11  ;;  %s1209_s30 = smov 16   ;;  %vm554_vm5 = vcmask 261248  }
  0x37   : > { %s841_s27 = sshll.u32 %s1191_s24, 4  ;;  %s629_s12 = sshll.u32 %s1386_s18, 4  ;;  %s630_s12 = int_to_ptr.vmem [resolvable:$true] %s629_s12 }
  0x38   : > { %380 = vmatpush.bf16.msra.mxu0 %v835_v2  ;;  %420 = vmatpush.bf16.msra.mxu1 %v837_v4  ;;  %s628_s14 = scalar_lea.hbm %s1465_s6, %s841_s27  ;;  %s601_s29 = scalar_lea.sflag [#allocation14], %s1360_s1 }
  0x39   : > { %s631_s19 = sshll.u32 %s628_s14, 4  ;;  %s632_s19 = int_to_ptr.hbm [resolvable:$true] %s631_s19 }
  0x3b   : > { %804 = vmatmul.msk.bf16.vlgmr.msra.gmra.mxu0 %vm369_vm0, %v352_v5  ;;  %813 = vmatmul.msk.bf16.vlgmr.msra.gmra.mxu1 %vm369_vm0, %v352_v5 }
  0x3c   : > { %587 = vmatpush.bf16.msrb.mxu1 %v840_v52 }
  0x40   : > { %588 = vmatpush.bf16.msrb.mxu1 %v839_v55 }
  0xb8   : > { %v382_v6 = vpop.f32.mrf.mxu0  ;;  %v422_v7 = vpop.f32.mrf.mxu1 }
  0xb9   : > { %v386_v8 = vpack.c.bf16 %v382_v6, %v382_v6  ;;  %v426_v9 = vmul.f32 0.17677669, %v422_v7 }
  0xbb   : > { %388 = vst.msk [vmem:[#allocation2] sm:$0xf] %vm387_vm1, %v386_v8  ;;  %v427_v10 = vpack.c.bf16 %v426_v9, %v426_v9 }
  0xbd   : > { %v490_v11 = vunpack.c.l.b16 %v427_v10 }
  0xbf   : > { %v491_v12 = vpack.c.b16 %v490_v11, %v490_v11 }
  0xc0   : > { %v384_v13 = vpop.f32.mrf.mxu0  ;;  %v424_v14 = vpop.f32.mrf.mxu1 }
  0xc1   : > { %492 = vrot.lane.b32.xlu2 %v491_v12, %s1206_s28 }
  0xc2   : > { %v428_v15 = vld [vmem:[#allocation2] sm:$0xf] }
  0xc3   : > { %v434_v16 = vsel %vm429_vm2, %v428_v15, 0  ;;  %v464_v17 = vunpack.c.l.b16 %v428_v15 }
  0xc4   : > { %443 = vmatpush.bf16.xpose.msra.mxu2 %v434_v16 }
  0xc5   : > { %v465_v18 = vpack.c.b16 %v464_v17, %v464_v17 }
  0xc7   : > { %466 = vrot.lane.b32.xlu1 %v465_v18, %s1207_s8 }
  0xcb   : > { %814 = vmatmul.msk.bf16.vlgmr.msra.gmra.mxu2 %vm429_vm2, %v427_v10 }
  0xcf   : > { %494 = vrot.lane.b32.xlu1 %v465_v18, %s1206_s28  ;;  %s1091_s28 = sshra.s32 %s632_s19, 4  ;;  %s1092_s28 = int_to_ptr.hbm [resolvable:$true] %s1091_s28 }
  0xd0   : > { %s1093_s8 = scalar_lea.hbm %s1092_s28, 16  ;;  %p1098_p10 = scmp.lt.s32.totalorder %s1092_s28, %s1465_s6 }
  0xd1   : > { %p1094_p1 = scmp.ne.s32.totalorder %s1092_s28, %s1093_s8 }
  0xd3   : > { %p1095_p3 = pnand %p1094_p1, %p1338_p4 }
  0xd5   : > { %p1096_p9 = pneg %p1095_p3 }
  0xd7   : > { %529 = vrot.lane.b32.xlu1 %v465_v18, %s1208_s13 }
 0x11b   : > { %v493_v37 = vpop.permute.xlu2 %492 }
 0x139   : > { %v467_v19 = vpop.permute.xlu1 %466 }
 0x13a   : > { %v473_v20 = vsel %vm471_vm3, %v467_v19, 0 }
 0x13b   : > { %482 = vmatpush.bf16.msra.mxu3 %v473_v20 }
 0x141   : > { %v495_v21 = vpop.permute.xlu1 %494 }
 0x142   : > { %v500_v22 = vsel %vm429_vm2, %v495_v21, 0 }
 0x143   : > { %509 = vmatpush.bf16.xpose.msrb.mxu3 %v500_v22 }
 0x149   : > { %v530_v23 = vpop.permute.xlu1 %529 }
 0x14a   : > { %v535_v24 = vsel %vm471_vm3, %v530_v23, 0 }
 0x14b   : > { %544 = vmatpush.bf16.msrb.mxu0 %v535_v24 }
 0x14e   : > { %v445_v25 = vpop.f32.mrf.mxu2 }
 0x14f   : > { %v450_v26 = vsel %vm449_vm4, %v445_v25, -inf }
 0x150   : > { %451 = vmax.xlane.f32.xlu0 %v450_v26 }
 0x156   : > { %v447_v27 = vpop.f32.mrf.mxu2 }
 0x1c3   : > { %v452_v28 = vpop.xlane.xlu0 %451 }
 0x1c4   : > { %v453_v29 = vsub.f32 %v445_v25, %v452_v28 }
 0x1c6   : > { %v454_v30 = vmul.f32 1.442695, %v453_v29 }
 0x1c8   : > { %949 = vpow2.f32 %v454_v30 }
 0x1ce   : > { %v950_v31 = vpop.eup %949 }
 0x1cf   : > { %v456_v32 = vsel %vm449_vm4, %v950_v31, 0.0 }
 0x1d0   : > { %457 = vadd.xlane.f32.xlu0 %v456_v32 }
 0x243   : > { %v458_v33 = vpop.xlane.xlu0 %457 }
 0x244   : > { %951 = vrcp.f32 %v458_v33 }
 0x24a   : > { %v952_v34 = vpop.eup %951 }
 0x24b   : > { %v460_v35 = vmul.f32 %v952_v34, %v950_v31 }
 0x24d   : > { %461 = vst.msk [vmem:[%s1386_s18] sm:$0xff] %vm449_vm4, %v460_v35  ;;  %v462_v36 = vpack.c.bf16 %v460_v35, %v460_v35 }
 0x24f   : > { %815 = vmatmul.msk.bf16.vlgmr.msra.gmra.mxu3 %vm449_vm4, %v462_v36 }
 0x25f   : > { %816 = vmatmul.msk.bf16.vlgmr.msrb.gmra.mxu3 %vm429_vm2, %v493_v37 }
 0x2d2   : > { %v484_v38 = vpop.f32.mrf.mxu3 }
 0x2d3   : > { %488 = vst.msk [vmem:[#allocation3] sm:$0xff] %vm429_vm2, %v484_v38 }
 0x2da   : > { %v486_v39 = vpop.f32.mrf.mxu3 }
 0x2e2   : > { %v511_v40 = vpop.f32.mrf.mxu3 }
 0x2e3   : > { %v515_v41 = vsel %vm449_vm4, %v511_v40, -inf }
 0x2e4   : > { %516 = vmax.xlane.f32.xlu2 %v515_v41 }
 0x2ea   : > { %v513_v42 = vpop.f32.mrf.mxu3 }
 0x357   : > { %v517_v43 = vpop.xlane.xlu2 %516 }
 0x358   : > { %v518_v44 = vsub.f32 %v511_v40, %v517_v43 }
 0x35a   : > { %v519_v45 = vmul.f32 1.442695, %v518_v44 }
 0x35c   : > { %953 = vpow2.f32 %v519_v45 }
 0x362   : > { %v954_v46 = vpop.eup %953 }
 0x363   : > { %v521_v47 = vsel %vm449_vm4, %v954_v46, 0.0 }
 0x364   : > { %522 = vadd.xlane.f32.xlu0 %v521_v47 }
 0x3d7   : > { %v523_v48 = vpop.xlane.xlu0 %522 }
 0x3d8   : > { %955 = vrcp.f32 %v523_v48 }
 0x3de   : > { %v956_v49 = vpop.eup %955 }
 0x3df   : > { %v525_v50 = vmul.f32 %v956_v49, %v954_v46 }
 0x3e1   : > { %817 = vst.msk [vmem:[%s1386_s18 + $0x8] sm:$0xff] %vm449_vm4, %v525_v50  ;;  %v528_v51 = vpack.c.bf16 %v525_v50, %v525_v50 }
 0x3e3   : > { %818 = vmatmul.msk.bf16.vlgmr.msrb.gmra.mxu0 %vm449_vm4, %v528_v51 }
 0x460   : > { %v546_v53 = vpop.f32.mrf.mxu0 }
 0x461   : > { %551 = vrot.lane.b32.xlu0 %v546_v53, %s1209_s30  ;;  %s1097_s30 = scalar_lea.hbm %s1465_s6, 32 }
 0x462   : > { %p1099_p11 = scmp.lt.s32.totalorder %s1097_s30, %s1093_s8 }
 0x464   : > { %p1100_p12 = por %p1099_p11, %p1098_p10 }
 0x466   : > { %p1101_p13 = pnand %p1100_p12, %p1096_p9 }
 0x468   : > { %v548_v54 = vpop.f32.mrf.mxu0 }
 0x4d3   : > { %v552_v56 = vpop.permute.xlu0 %551 }
 0x4d4   : > { %555 = vst.msk [vmem:[#allocation3] sm:$0xff] %vm554_vm5, %v552_v56 }
 0x4db   : > { %v556_v57 = vld [vmem:[#allocation3] sm:$0xff] }
 0x4dc   : > { %v557_v58 = vpack.c.bf16 %v556_v57, %v556_v57 }
 0x4de   : > { %827 = vmatmul.msk.bf16.vlgmr.msrb.gmra.mxu1 %vm369_vm0, %v557_v58 }
 0x4df   : > { %1104 = shalt.err (!%p1101_p13)
}
 0x4e0   : > { %s1210_s18 = smov 128   ;;  %s1211_s27 = smov 8   ;;  %v948_v59 = vld [vmem:[%s1463_s4] ss:$0 sm:$0xff] }
 0x4e1   : > { %857 = dma.vmem_to_hbm [thread:$0]  (%p1338_p4), %s630_s12, 256, %s632_s19, %s601_s29, %s1210_s18, %s1210_s18, %s1211_s27  }
 0x4e2   : > { %s830_s9 = sshll.u32 %s1191_s24, 3  ;;  %s1478_s28 = sshll.u32 %s1360_s1, 3 }
 0x4e3   : > { %s612_s13 = scalar_lea.hbm %s1464_s5, %s830_s9  ;;  %s338_s8 = scalar_lea.vmem [#allocation12], %s1478_s28 }
 0x4e4   : > { %s614_s11 = sshll.u32 %s338_s8, 4  ;;  %s616_s30 = sshll.u32 %s612_s13, 4  ;;  %s615_s11 = int_to_ptr.vmem [resolvable:$true] %s614_s11  ;;  %s617_s30 = int_to_ptr.hbm [resolvable:$true] %s616_s30 }
 0x4e5   : > { %s596_s24 = scalar_lea.sflag [#allocation6], %s1360_s1  ;;  %s1119_s12 = sshra.s32 %s617_s30, 4  ;;  %s1120_s12 = int_to_ptr.hbm [resolvable:$true] %s1119_s12 }
 0x4e6   : > { %s1121_s19 = scalar_lea.hbm %s1120_s12, 8  ;;  %s1125_s27 = scalar_lea.hbm %s1464_s5, 16 }
 0x4e7   : > { %p1122_p0 = scmp.ne.s32.totalorder %s1120_s12, %s1121_s19  ;;  %p1126_p8 = scmp.lt.s32.totalorder %s1120_s12, %s1464_s5 }
 0x4e8   : > { %p1127_p1 = scmp.lt.s32.totalorder %s1125_s27, %s1121_s19 }
 0x4e9   : > { %p1123_p2 = pnand %p1122_p0, %p1338_p4 }
 0x4ea   : > { %p1128_p3 = por %p1127_p1, %p1126_p8 }
 0x4eb   : > { %p1124_p5 = pneg %p1123_p2 }
 0x4ed   : > { %p1129_p9 = pnand %p1128_p3, %p1124_p5 }
 0x55b   : > { %v590_v60 = vpop.f32.mrf.mxu1 }
 0x55c   : > { %v591_v61 = vadd.f32 %v948_v59, %v590_v60 }
 0x55e   : > { %594 = vst.msk [vmem:[%s338_s8] sm:$0xff] %vm369_vm0, %v591_v61 }
 0x55f   : > { %1132 = shalt.err (!%p1129_p9)
}
 0x560   : > { %856 = dma.vmem_to_hbm [thread:$0]  (%p1338_p4), %s615_s11, 128, %s617_s30, %s596_s24  }
 0x563   : > { %v592_v62 = vpop.f32.mrf.mxu1 }
 0x564 PF: > { %s646_s1 = sand.u32 1, %s1179_s21   ;;  %p875_p10 = pnand %p786_p6, %p1346_p7 }
 0x565   : > { %s647_s14 = scalar_lea.sflag [#allocation6], %s646_s1 }
 0x566   : > { %p876_p11 = pneg %p875_p10 }
 0x568   : > { %1170 = dma.done.wait (%p876_p11), %s647_s14, 128  }
 0x569   : > { %1172 = vsyncadd (%p876_p11), %s647_s14, 4294967168  ;;  %s657_s13 = scalar_lea.sflag [#allocation14], %s646_s1 }
 0x56a   : > { %1174 = dma.done.wait (%p876_p11), %s657_s13, 256  }
 0x56b   : > { %1176 = vsyncadd (%p876_p11), %s657_s13, 4294967040  ;;  %s28_s26 = sadd.s32 1, %s1199_s26   ;;  %s1479_s21 = smov %s1183_s22 }
 0x56c   : > { %p25_p12 = scmp.ge.s32.totalorder %s28_s26, 4   ;;  %s1480_s22 = smov %s1187_s23 }
 0x56d   : > { %s1481_s23 = smov %s1344_s16  ;;  %s1482_s24 = smov %s1195_s25 }
 0x56e   : > { %s1483_s25 = smov %s1485_s10  ;;  %27 = sbr.rel (!%p25_p12) target bundleno = 13 (0xd), region = 120 }
 0x573   :  { %663 = vsyncpa [#allocation5], 1 }
 0x574   :  { %665 = vsyncpa [#allocation5 + $0x1], 1 }
 0x575   :  { %666 = vsyncpa [#allocation8], 1 }
 0x576   :  { %667 = vsyncpa [#allocation11], 1 }
 0x577   :  { %668 = vsyncpa [#allocation6], 1 }
 0x578   :  { %670 = vsyncpa [#allocation6 + $0x1], 1 }
 0x579   :  { %671 = vsyncpa [#allocation14], 1 }
 0x57a   :  { %673 = vsyncpa [#allocation14 + $0x1], 1 }

</bundles_post_ra>
